<compile_context>
chip_gen: v7x
topology: tpu7x:2x2x1
jax: 0.10.0
libtpu: 0.0.40
codegen_flags: <defaults>
</compile_context>

<pallas_src>
import functools
import math

import jax
import jax.numpy as jnp
from jax import lax
from jax.experimental import pallas as pl
from jax.experimental.pallas import tpu as pltpu

LANES = 128
SUBLANES = 8
TINY_N = 1 << 15      # below this, fused jnp beats any kernel launch
_UNROLL = 8


def _round_up(x, m):
    return (x + m - 1) // m * m


@functools.lru_cache(maxsize=None)
def _tpu_config():
    """(num_partials, max_row_tile) per chip generation (perf-only choice)."""
    kind = ""
    try:
        kind = jax.devices()[0].device_kind.lower()
    except Exception:
        pass
    # Chips exposing 2 TensorCores per device (megacore v4/v5p, v7x).
    two_tc = any(t in kind for t in ("v4", "v5p", "v7", "7x"))
    if "v7" in kind or "7x" in kind:
        max_row_tile = 8192   # 4 MiB/input tile; 16 MiB double-buffered < 32 MiB scoped
    elif "v6" in kind:
        max_row_tile = 4096   # 2 MiB/input tile; 8 MiB double-buffered < 32 MiB scoped
    else:
        max_row_tile = 2048   # 1 MiB/input tile; safe for v5e's 16 MiB scoped default
    return (2 if two_tc else 1), max_row_tile


def _tiling(rows, num_partials, max_row_tile):
    rows_per_part = pl.cdiv(rows, num_partials)
    tiles_per_part = pl.cdiv(rows_per_part, max_row_tile)
    # Rebalance: smallest 8-aligned tile that still covers rows_per_part in
    # tiles_per_part steps (instead of padding up to max_row_tile).
    row_tile = _round_up(pl.cdiv(rows_per_part, tiles_per_part), SUBLANES)
    return tiles_per_part, row_tile


def _smooth_l1_partial_kernel(p_ref, t_ref, out_ref, acc_ref, *,
                              blocks_per_tile, tiles_per_part, row_tile,
                              valid_rows, need_mask):
    """Accumulates per-lane/per-sublane SmoothL1 partial sums for one partial."""
    c = pl.program_id(0)
    i = pl.program_id(1)

    @pl.when(i == 0)
    def _():
        acc_ref[...] = jnp.zeros_like(acc_ref)

    base_row = (c * tiles_per_part + i) * row_tile
    if need_mask:
        row_iota = lax.broadcasted_iota(jnp.int32, (SUBLANES, LANES), 0)

    def chunk(b, carry):
        rs = pl.multiple_of(b * SUBLANES, SUBLANES)
        d = p_ref[pl.ds(rs, SUBLANES), :] - t_ref[pl.ds(rs, SUBLANES), :]
        ad = jnp.abs(d)
        m = jnp.minimum(ad, 1.0)
        elem = m * (ad - 0.5 * m)          # branch-free SmoothL1 (beta = 1.0)
        if need_mask:
            # Kill garbage rows of the (possibly) partial trailing block.
            elem = jnp.where(base_row + rs + row_iota < valid_rows, elem, 0.0)
        return carry + elem

    part = lax.fori_loop(0, blocks_per_tile, chunk,
                         jnp.zeros((SUBLANES, LANES), jnp.float32),
                         unroll=min(_UNROLL, blocks_per_tile))
    acc_ref[...] += part

    @pl.when(i == pl.num_programs(1) - 1)
    def _():
        out_ref[...] = acc_ref[...]


def _smooth_l1_mean_pallas(p, t, n_true):
    num_partials, max_row_tile = _tpu_config()

    if n_true % (SUBLANES * LANES) == 0:
        rows = n_true // LANES             # zero-copy: reshape below is a bitcast
    else:
        # Ragged tail: pad only a <=1023-element sliver with zeros (zero diff
        # contributes exactly 0) so the (rows, 128) view is lane/sublane dense.
        padded = _round_up(n_true, SUBLANES * LANES)
        p = jnp.pad(p, (0, padded - n_true))
        t = jnp.pad(t, (0, padded - n_true))
        rows = padded // LANES

    tiles_per_part, row_tile = _tiling(rows, num_partials, max_row_tile)
    if num_partials > 1 and (num_partials - 1) * tiles_per_part * row_tile >= rows:
        num_partials = 1                   # too small to split across cores
        tiles_per_part, row_tile = _tiling(rows, 1, max_row_tile)

    grid_rows = num_partials * tiles_per_part * row_tile
    need_mask = grid_rows > rows           # only trailing partial block(s)

    p2 = p.reshape(rows, LANES)
    t2 = t.reshape(rows, LANES)

    kernel = functools.partial(
        _smooth_l1_partial_kernel,
        blocks_per_tile=row_tile // SUBLANES,
        tiles_per_part=tiles_per_part,
        row_tile=row_tile,
        valid_rows=rows,
        need_mask=need_mask)

    in_map = lambda c, i: (c * tiles_per_part + i, 0)

    partials = pl.pallas_call(
        kernel,
        out_shape=jax.ShapeDtypeStruct(
            (num_partials * SUBLANES, LANES), jnp.float32),
        grid_spec=pltpu.PrefetchScalarGridSpec(
            num_scalar_prefetch=0,
            grid=(num_partials, tiles_per_part),
            in_specs=[
                pl.BlockSpec((row_tile, LANES), in_map),
                pl.BlockSpec((row_tile, LANES), in_map),
            ],
            out_specs=pl.BlockSpec((SUBLANES, LANES), lambda c, i: (c, 0)),
            scratch_shapes=[pltpu.VMEM((SUBLANES, LANES), jnp.float32)],
        ),
        compiler_params=pltpu.CompilerParams(
            dimension_semantics=("parallel", "arbitrary")),
    )(p2, t2)

    # One cross-lane reduce in the wrapper; divide by the TRUE element count.
    return jnp.sum(partials) * (1.0 / n_true)


def _smooth_l1_mean_jnp(preds, targets):
    d = preds.astype(jnp.float32) - targets.astype(jnp.float32)
    ad = jnp.abs(d)
    m = jnp.minimum(ad, 1.0)
    return jnp.mean(m * (ad - 0.5 * m))


@functools.partial(jax.jit, static_argnames=("use_pallas",))
def box3d_loss(preds, targets, *, use_pallas=None):
    """Pallas equivalent of Box3DLoss.forward: mean SmoothL1 over all elements."""
    assert preds.shape == targets.shape
    n_true = math.prod(preds.shape)
    assert n_true > 0
    if use_pallas is None:
        use_pallas = n_true >= TINY_N
    if not use_pallas:
        # Launch overhead would dominate for the module's real (B, 6) shapes.
        return _smooth_l1_mean_jnp(preds, targets)
    p = preds.astype(jnp.float32).reshape(-1)
    t = targets.astype(jnp.float32).reshape(-1)
    return _smooth_l1_mean_pallas(p, t, n_true)


if __name__ == "__main__":
    def ref_loss(p, t):
        d = p - t
        ad = jnp.abs(d)
        return jnp.mean(jnp.where(ad < 1.0, 0.5 * d * d, ad - 0.5))

    key = jax.random.PRNGKey(0)
    kp, kt = jax.random.split(key)
    batch_size = 2
    preds = jax.random.normal(kp, (batch_size, 6), dtype=jnp.float32)
    targets = jax.random.normal(kt, (batch_size, 6), dtype=jnp.float32)

    # Module-sized input pushed through the Pallas kernel (forced; default
    # routing short-circuits tiny inputs to fused jnp).
    loss = box3d_loss(preds, targets, use_pallas=True)
    jax.block_until_ready(loss)
    assert jnp.allclose(loss, ref_loss(preds, targets), atol=1e-6, rtol=1e-6), (
        loss, ref_loss(preds, targets))

    # Default tiny-input path.
    loss_d = box3d_loss(preds, targets)
    jax.block_until_ready(loss_d)
    assert jnp.allclose(loss_d, ref_loss(preds, targets), atol=1e-6, rtol=1e-6)

    # Non-aligned batch: exercises the <=1023-element sliver pad.
    kp2, kt2 = jax.random.split(jax.random.PRNGKey(1))
    p2 = jax.random.normal(kp2, (1000, 6), dtype=jnp.float32) * 3.0
    t2 = jax.random.normal(kt2, (1000, 6), dtype=jnp.float32)
    l2 = box3d_loss(p2, t2, use_pallas=True)
    jax.block_until_ready(l2)
    assert jnp.allclose(l2, ref_loss(p2, t2), atol=1e-6, rtol=1e-5), (
        l2, ref_loss(p2, t2))

    # Aligned batch (6*8192 % 1024 == 0): zero-copy bitcast path, default routing.
    kp3, kt3 = jax.random.split(jax.random.PRNGKey(2))
    p3 = jax.random.normal(kp3, (8192, 6), dtype=jnp.float32) * 2.0
    t3 = jax.random.normal(kt3, (8192, 6), dtype=jnp.float32)
    l3 = box3d_loss(p3, t3)
    jax.block_until_ready(l3)
    assert jnp.allclose(l3, ref_loss(p3, t3), atol=1e-6, rtol=1e-4), (
        l3, ref_loss(p3, t3))

    # Larger ragged batches sized so the grid over-covers the rows on the
    # per-chip tiling configs, exercising the in-kernel trailing-row mask.
    for seed, b in ((3, 50000), (4, 90624)):
        kpa, kta = jax.random.split(jax.random.PRNGKey(seed))
        pa = jax.random.normal(kpa, (b, 6), dtype=jnp.float32) * 2.0
        ta = jax.random.normal(kta, (b, 6), dtype=jnp.float32)
        la = box3d_loss(pa, ta)
        jax.block_until_ready(la)
        assert jnp.allclose(la, ref_loss(pa, ta), atol=1e-6, rtol=1e-4), (
            b, la, ref_loss(pa, ta))

    print("KERNEL_OK")
</pallas_src>

<mosaic_0001>
module attributes {stable_mosaic.version = 11 : i64} {
  func.func @_smooth_l1_partial_kernel(%arg0: i32, %arg1: i32, %arg2: memref<8x128xf32, #tpu.memory_space<vmem>>, %arg3: memref<8x128xf32, #tpu.memory_space<vmem>>, %arg4: memref<8x128xf32, #tpu.memory_space<vmem>>, %arg5: memref<8x128xf32, #tpu.memory_space<vmem>>) attributes {dimension_semantics = [#tpu.dimension_semantics<parallel>, #tpu.dimension_semantics<arbitrary>], iteration_bounds = array<i64: 1, 1>, scalar_prefetch = 0 : i64, scratch_operands = 1 : i64, tpu.core_type = #tpu.core_type<tc>, window_params = [{transform_indices = @transform_0, window_bounds = array<i64: 8, 128>}, {transform_indices = @transform_1, window_bounds = array<i64: 8, 128>}, {transform_indices = @transform_2, window_bounds = array<i64: 8, 128>}]} {
    %c0_i32 = arith.constant 0 : i32
    %0 = arith.cmpi eq, %arg1, %c0_i32 : i32
    %1 = arith.extui %0 : i1 to i32
    %c0_i32_0 = arith.constant 0 : i32
    %2 = arith.cmpi ne, %1, %c0_i32_0 : i32
    scf.if %2 {
      %cst_11 = arith.constant 0.000000e+00 : f32
      %25 = vector.broadcast %cst_11 : f32 to vector<8x128xf32>
      %c0_12 = arith.constant 0 : index
      %c0_13 = arith.constant 0 : index
      %26 = vector.load %arg5[%c0_12, %c0_13] : memref<8x128xf32, #tpu.memory_space<vmem>>, vector<8x128xf32>
      tpu.vector_store %arg5[%c0_12, %c0_13], %25 {strides = array<i32>} : memref<8x128xf32, #tpu.memory_space<vmem>>, vector<8x128xf32>,
    } else {
    }
    %cst = arith.constant 0.000000e+00 : f32
    %3 = vector.broadcast %cst : f32 to vector<8x128xf32>
    %c0_i32_1 = arith.constant 0 : i32
    %c8_i32 = arith.constant 8 : i32
    %4 = arith.muli %c0_i32_1, %c8_i32 : i32
    %5 = tpu.assume_multiple %4, 8 : i32
    %6 = arith.index_cast %5 : i32 to index
    %c0 = arith.constant 0 : index
    %7 = vector.load %arg2[%6, %c0] : memref<8x128xf32, #tpu.memory_space<vmem>>, vector<8x128xf32>
    %8 = arith.index_cast %5 : i32 to index
    %c0_2 = arith.constant 0 : index
    %9 = vector.load %arg3[%8, %c0_2] : memref<8x128xf32, #tpu.memory_space<vmem>>, vector<8x128xf32>
    %10 = arith.subf %7, %9 : vector<8x128xf32>
    %11 = math.absf %10 : vector<8x128xf32>
    %cst_3 = arith.constant 1.000000e+00 : f32
    %12 = vector.broadcast %cst_3 : f32 to vector<8x128xf32>
    %13 = arith.minimumf %11, %12 : vector<8x128xf32>
    %cst_4 = arith.constant 5.000000e-01 : f32
    %14 = vector.broadcast %cst_4 : f32 to vector<8x128xf32>
    %15 = arith.mulf %14, %13 : vector<8x128xf32>
    %16 = arith.subf %11, %15 : vector<8x128xf32>
    %17 = arith.mulf %13, %16 : vector<8x128xf32>
    %18 = arith.addf %3, %17 : vector<8x128xf32>
    %c1_i32 = arith.constant 1 : i32
    %c0_5 = arith.constant 0 : index
    %c0_6 = arith.constant 0 : index
    %19 = vector.load %arg5[%c0_5, %c0_6] : memref<8x128xf32, #tpu.memory_space<vmem>>, vector<8x128xf32>
    %20 = arith.addf %19, %18 : vector<8x128xf32>
    %c0_7 = arith.constant 0 : index
    %c0_8 = arith.constant 0 : index
    %21 = vector.load %arg5[%c0_7, %c0_8] : memref<8x128xf32, #tpu.memory_space<vmem>>, vector<8x128xf32>
    tpu.vector_store %arg5[%c0_7, %c0_8], %20 {strides = array<i32>} : memref<8x128xf32, #tpu.memory_space<vmem>>, vector<8x128xf32>,
    %c0_i32_9 = arith.constant 0 : i32
    %22 = arith.cmpi eq, %arg1, %c0_i32_9 : i32
    %23 = arith.extui %22 : i1 to i32
    %c0_i32_10 = arith.constant 0 : i32
    %24 = arith.cmpi ne, %23, %c0_i32_10 : i32
    scf.if %24 {
      %c0_11 = arith.constant 0 : index
      %c0_12 = arith.constant 0 : index
      %25 = vector.load %arg5[%c0_11, %c0_12] : memref<8x128xf32, #tpu.memory_space<vmem>>, vector<8x128xf32>
      %c0_13 = arith.constant 0 : index
      %c0_14 = arith.constant 0 : index
      %26 = vector.load %arg4[%c0_13, %c0_14] : memref<8x128xf32, #tpu.memory_space<vmem>>, vector<8x128xf32>
      tpu.vector_store %arg4[%c0_13, %c0_14], %25 {strides = array<i32>} : memref<8x128xf32, #tpu.memory_space<vmem>>, vector<8x128xf32>,
    } else {
    }
    return
  }
  func.func @transform_0(%arg0: i32, %arg1: i32) -> (i32, i32) {
    %c1_i32 = arith.constant 1 : i32
    %0 = arith.muli %arg0, %c1_i32 : i32
    %1 = arith.addi %0, %arg1 : i32
    %c0_i32 = arith.constant 0 : i32
    %c0_i32_0 = arith.constant 0 : i32
    return %1, %c0_i32 : i32, i32
  }
  func.func @transform_1(%arg0: i32, %arg1: i32) -> (i32, i32) {
    %c1_i32 = arith.constant 1 : i32
    %0 = arith.muli %arg0, %c1_i32 : i32
    %1 = arith.addi %0, %arg1 : i32
    %c0_i32 = arith.constant 0 : i32
    %c0_i32_0 = arith.constant 0 : i32
    return %1, %c0_i32 : i32, i32
  }
  func.func @transform_2(%arg0: i32, %arg1: i32) -> (i32, i32) {
    %c0_i32 = arith.constant 0 : i32
    %c0_i32_0 = arith.constant 0 : i32
    return %arg0, %c0_i32 : i32, i32
  }
}

</mosaic_0001>

<bundles_post_ra>
// kernel: box3d_loss.1
= control target key start
LH: loop header
LB: loop body
LE: loop exit
PB: predicated region body
PF: predicated region fallthrough
CT: control target
= control target key end

     0   :  { %s107_s0 = inlined_call_operand.vmem [shape: f32[8,128], index: 0, kind: input, shape index: {}]   ;;  %s108_s1 = inlined_call_operand.vmem [shape: f32[8,128], index: 1, kind: input, shape index: {}]   ;;  %s109_s2 = inlined_call_operand.vmem [shape: f32[8,128], index: 2, kind: output, shape index: {}]  }
   0x1   :  { %v50_v0 = vld [vmem:[%s107_s0] sm:$0xff] }
   0x2   :  { %v51_v1 = vld [vmem:[%s108_s1] sm:$0xff] }
   0x3   :  { %v52_v2 = vsub.f32 %v50_v0, %v51_v1 }
   0x5   :  { %v53_v3 = vand.u32 2147483647, %v52_v2 }
   0x7   :  { %v54_v4 = vmin.f32 %v53_v3, 1.0 }
   0x9   :  { %v55_v5 = vmul.f32 0.5, %v54_v4 }
   0xb   :  { %v56_v6 = vsub.f32 %v53_v3, %v55_v5 }
   0xd   :  { %v57_v7 = vmul.f32 %v56_v6, %v54_v4 }
   0xf   :  { %66 = vst [vmem:[%s109_s2] sm:$0xff] %v57_v7 }

</bundles_post_ra>
